<compile_context>
chip_gen: v7x
topology: tpu7x:2x2x1
jax: 0.10.0
libtpu: 0.0.40
codegen_flags: <defaults>
</compile_context>

<pallas_src>
import functools

import jax
import jax.numpy as jnp
from jax.experimental import pallas as pl
from jax.experimental.pallas import tpu as pltpu


def _round_up(a, b):
    return ((a + b - 1) // b) * b


def _focal_kernel(x_ref, t_ref, o_ref, acc_ref, *,
                  alpha, gamma, n_valid, block_rows, blocks_per_split,
                  need_mask):
    c = pl.program_id(0)   # parallel split (TensorCore shard on v7x)
    i = pl.program_id(1)   # sequential reduction axis within the split

    @pl.when(i == 0)
    def _():
        acc_ref[...] = jnp.zeros_like(acc_ref)

    x = x_ref[...].astype(jnp.float32)
    t = t_ref[...].astype(jnp.float32)

    # BCE-with-logits, reduction='none' (numerically stable form, as torch).
    u = jnp.exp(-jnp.abs(x))                                   # EUP exp (reused)
    bce = jnp.maximum(x, 0.0) - x * t + jnp.log1p(u)           # EUP log1p

    # at = [alpha, 1-alpha].gather(0, targets.long())
    t_idx = t.astype(jnp.int32)                                # torch .long() truncation
    at = jnp.where(t_idx == 0, jnp.float32(alpha), jnp.float32(1.0 - alpha))

    # pt = exp(-BCE).  For binary targets this is exactly sigmoid((2t-1)*x),
    # which we evaluate from the already-computed u = exp(-|x|):
    #   pt = 1/(1+u) if (2t-1)*x >= 0 else u/(1+u)
    z_nonneg = (2.0 * t - 1.0) * x >= 0.0
    pt = jnp.where(z_nonneg, jnp.float32(1.0), u) / (1.0 + u)

    one_m_pt = 1.0 - pt
    if gamma == 2:
        mod = one_m_pt * one_m_pt          # VPU multiplies, no EUP
    else:
        mod = one_m_pt ** int(gamma)       # integer_pow -> VPU multiplies

    f_loss = at * mod * bce

    if need_mask:
        # Zero out padded tail elements (flat index >= n_valid).
        row_off = (c * blocks_per_split + i) * block_rows
        rows = jax.lax.broadcasted_iota(jnp.int32, f_loss.shape, 0)
        lanes = jax.lax.broadcasted_iota(jnp.int32, f_loss.shape, 1)
        gidx = (row_off + rows) * f_loss.shape[1] + lanes
        f_loss = jnp.where(gidx < n_valid, f_loss, 0.0)

    # Keep the reduction vectorized: sublane-reduce the block into the
    # per-lane accumulator; cross-lane reduction happens once in the wrapper.
    acc_ref[...] += jnp.sum(f_loss, axis=0, keepdims=True)

    @pl.when(i == pl.num_programs(1) - 1)
    def _():
        o_ref[0] = acc_ref[...]            # (1, 128) per-split partial sums


def weighted_focal_loss(inputs, targets, alpha=0.25, gamma=2,
                        block_rows=2048, num_splits=2):
    """Pallas implementation of WeightedFocalLoss.forward -> scalar mean loss.

    `inputs`/`targets` are flattened (the torch module's alpha-gather only
    broadcasts correctly for effectively 1-D tensors). Any dtype is accepted;
    the kernel up-casts to f32 internally.
    """
    lanes = 128
    x = inputs.reshape(-1)
    t = targets.reshape(-1)
    n = x.shape[0]

    num_splits = max(1, int(num_splits))
    rows = pl.cdiv(n, lanes)
    rows_per_split = pl.cdiv(rows, num_splits)
    # Block rows: multiple of 8 (sublane tiling), capped so that
    # 2 inputs x 2 pipeline buffers stays a few MiB (safe on v7x 64 MiB VMEM).
    br = min(int(block_rows), _round_up(rows_per_split, 8))
    br = _round_up(br, 8)
    blocks_per_split = pl.cdiv(rows_per_split, br)
    padded_rows = num_splits * blocks_per_split * br
    pad = padded_rows * lanes - n
    if pad:
        x = jnp.pad(x, (0, pad))
        t = jnp.pad(t, (0, pad))
    x2 = x.reshape(padded_rows, lanes)
    t2 = t.reshape(padded_rows, lanes)

    kernel = functools.partial(
        _focal_kernel,
        alpha=float(alpha),
        gamma=int(gamma),
        n_valid=n,
        block_rows=br,
        blocks_per_split=blocks_per_split,
        need_mask=(pad != 0),
    )

    in_map = lambda c, i: (c * blocks_per_split + i, 0)

    partial = pl.pallas_call(
        kernel,
        out_shape=jax.ShapeDtypeStruct((num_splits, 1, lanes), jnp.float32),
        grid_spec=pltpu.PrefetchScalarGridSpec(
            num_scalar_prefetch=0,
            grid=(num_splits, blocks_per_split),
            in_specs=[
                pl.BlockSpec((br, lanes), in_map),
                pl.BlockSpec((br, lanes), in_map),
            ],
            out_specs=pl.BlockSpec((1, 1, lanes), lambda c, i: (c, 0, 0)),
            scratch_shapes=[pltpu.VMEM((1, lanes), jnp.float32)],
        ),
        compiler_params=pltpu.CompilerParams(
            # split axis sharded across TensorCores (v7x); reduction axis serial
            dimension_semantics=("parallel", "arbitrary"),
        ),
    )(x2, t2)

    return jnp.sum(partial) / jnp.float32(n)


def _reference(inputs, targets, alpha=0.25, gamma=2):
    x = inputs.astype(jnp.float32).reshape(-1)
    t = targets.astype(jnp.float32).reshape(-1)
    bce = jnp.maximum(x, 0.0) - x * t + jnp.log1p(jnp.exp(-jnp.abs(x)))
    at = jnp.where(t.astype(jnp.int32) == 0, alpha, 1.0 - alpha)
    pt = jnp.exp(-bce)
    return jnp.mean(at * (1.0 - pt) ** gamma * bce)


if __name__ == "__main__":
    key = jax.random.PRNGKey(0)

    # Test 1: flat size matching e.g. a (2, 4, 16, 16) logit map flattened.
    k1, k2, k3, k4 = jax.random.split(key, 4)
    N1 = 2 * 4 * 16 * 16  # 2048
    x1 = jax.random.normal(k1, (N1,), dtype=jnp.float32)
    t1 = jax.random.bernoulli(k2, p=0.3, shape=(N1,)).astype(jnp.float32)
    loss1 = jax.block_until_ready(weighted_focal_loss(x1, t1, alpha=0.25, gamma=2))
    ref1 = _reference(x1, t1)
    assert jnp.allclose(loss1, ref1, rtol=1e-5, atol=1e-6), (loss1, ref1)

    # Test 2: ragged size (exercises the padded-tail mask path).
    N2 = 5000
    x2 = jax.random.normal(k3, (N2,), dtype=jnp.float32)
    t2 = jax.random.bernoulli(k4, p=0.5, shape=(N2,)).astype(jnp.float32)
    loss2 = jax.block_until_ready(weighted_focal_loss(x2, t2, alpha=0.25, gamma=2))
    ref2 = _reference(x2, t2)
    assert jnp.allclose(loss2, ref2, rtol=1e-5, atol=1e-6), (loss2, ref2)

    print("KERNEL_OK")
</pallas_src>

<mosaic_0001>
module attributes {stable_mosaic.version = 11 : i64} {
  func.func @_focal_kernel(%arg0: i32, %arg1: i32, %arg2: memref<8x128xf32, #tpu.memory_space<vmem>>, %arg3: memref<8x128xf32, #tpu.memory_space<vmem>>, %arg4: memref<1x1x128xf32, #tpu.memory_space<vmem>>, %arg5: memref<1x128xf32, #tpu.memory_space<vmem>>) attributes {dimension_semantics = [#tpu.dimension_semantics<parallel>, #tpu.dimension_semantics<arbitrary>], iteration_bounds = array<i64: 2, 1>, scalar_prefetch = 0 : i64, scratch_operands = 1 : i64, tpu.core_type = #tpu.core_type<tc>, window_params = [{transform_indices = @transform_0, window_bounds = array<i64: 8, 128>}, {transform_indices = @transform_1, window_bounds = array<i64: 8, 128>}, {transform_indices = @transform_2, window_bounds = array<i64: 1, 1, 128>}]} {
    %c0_i32 = arith.constant 0 : i32
    %0 = arith.cmpi eq, %arg1, %c0_i32 : i32
    %1 = arith.extui %0 : i1 to i32
    %c0_i32_0 = arith.constant 0 : i32
    %2 = arith.cmpi ne, %1, %c0_i32_0 : i32
    scf.if %2 {
      %cst_21 = arith.constant 0.000000e+00 : f32
      %46 = vector.broadcast %cst_21 : f32 to vector<1x128xf32>
      %c0_22 = arith.constant 0 : index
      %c0_23 = arith.constant 0 : index
      %47 = vector.load %arg5[%c0_22, %c0_23] : memref<1x128xf32, #tpu.memory_space<vmem>>, vector<1x128xf32>
      tpu.vector_store %arg5[%c0_22, %c0_23], %46 {strides = array<i32>} : memref<1x128xf32, #tpu.memory_space<vmem>>, vector<1x128xf32>,
    } else {
    }
    %c0 = arith.constant 0 : index
    %c0_1 = arith.constant 0 : index
    %3 = vector.load %arg2[%c0, %c0_1] : memref<8x128xf32, #tpu.memory_space<vmem>>, vector<8x128xf32>
    %c0_2 = arith.constant 0 : index
    %c0_3 = arith.constant 0 : index
    %4 = vector.load %arg3[%c0_2, %c0_3] : memref<8x128xf32, #tpu.memory_space<vmem>>, vector<8x128xf32>
    %5 = math.absf %3 : vector<8x128xf32>
    %cst = arith.constant 0.000000e+00 : f32
    %6 = vector.broadcast %cst : f32 to vector<8x128xf32>
    %7 = arith.subf %6, %5 : vector<8x128xf32>
    %8 = math.exp %7 : vector<8x128xf32>
    %cst_4 = arith.constant 0.000000e+00 : f32
    %9 = vector.broadcast %cst_4 : f32 to vector<8x128xf32>
    %10 = arith.maximumf %3, %9 : vector<8x128xf32>
    %11 = arith.mulf %3, %4 : vector<8x128xf32>
    %12 = arith.subf %10, %11 : vector<8x128xf32>
    %13 = math.log1p %8 : vector<8x128xf32>
    %14 = arith.addf %12, %13 : vector<8x128xf32>
    %15 = arith.fptosi %4 : vector<8x128xf32> to vector<8x128xi32>
    %c0_i32_5 = arith.constant 0 : i32
    %16 = vector.broadcast %c0_i32_5 : i32 to vector<8x128xi32>
    %17 = arith.cmpi eq, %15, %16 : vector<8x128xi32>
    %cst_6 = arith.constant 2.500000e-01 : f32
    %cst_7 = arith.constant 7.500000e-01 : f32
    %18 = vector.broadcast %cst_6 : f32 to vector<8x128xf32>
    %19 = vector.broadcast %cst_7 : f32 to vector<8x128xf32>
    %20 = arith.select %17, %18, %19 : vector<8x128xi1>, vector<8x128xf32>
    %cst_8 = arith.constant 2.000000e+00 : f32
    %21 = vector.broadcast %cst_8 : f32 to vector<8x128xf32>
    %22 = arith.mulf %21, %4 : vector<8x128xf32>
    %cst_9 = arith.constant 1.000000e+00 : f32
    %23 = vector.broadcast %cst_9 : f32 to vector<8x128xf32>
    %24 = arith.subf %22, %23 : vector<8x128xf32>
    %25 = arith.mulf %24, %3 : vector<8x128xf32>
    %cst_10 = arith.constant 0.000000e+00 : f32
    %26 = vector.broadcast %cst_10 : f32 to vector<8x128xf32>
    %27 = arith.cmpf oge, %25, %26 : vector<8x128xf32>
    %cst_11 = arith.constant 1.000000e+00 : f32
    %28 = vector.broadcast %cst_11 : f32 to vector<8x128xf32>
    %29 = arith.select %27, %28, %8 : vector<8x128xi1>, vector<8x128xf32>
    %cst_12 = arith.constant 1.000000e+00 : f32
    %30 = vector.broadcast %cst_12 : f32 to vector<8x128xf32>
    %31 = arith.addf %30, %8 : vector<8x128xf32>
    %32 = arith.divf %29, %31 : vector<8x128xf32>
    %cst_13 = arith.constant 1.000000e+00 : f32
    %33 = vector.broadcast %cst_13 : f32 to vector<8x128xf32>
    %34 = arith.subf %33, %32 : vector<8x128xf32>
    %35 = arith.mulf %34, %34 : vector<8x128xf32>
    %36 = arith.mulf %20, %35 : vector<8x128xf32>
    %37 = arith.mulf %36, %14 : vector<8x128xf32>
    %c0_14 = arith.constant 0 : index
    %c0_15 = arith.constant 0 : index
    %38 = vector.load %arg5[%c0_14, %c0_15] : memref<1x128xf32, #tpu.memory_space<vmem>>, vector<1x128xf32>
    %cst_16 = arith.constant dense<0.000000e+00> : vector<128xf32>
    %39 = vector.multi_reduction <add>, %37, %cst_16 [0] : vector<8x128xf32> to vector<128xf32>
    %40 = vector.shape_cast %39 : vector<128xf32> to vector<1x128xf32>
    %41 = arith.addf %38, %40 : vector<1x128xf32>
    %c0_17 = arith.constant 0 : index
    %c0_18 = arith.constant 0 : index
    %42 = vector.load %arg5[%c0_17, %c0_18] : memref<1x128xf32, #tpu.memory_space<vmem>>, vector<1x128xf32>
    tpu.vector_store %arg5[%c0_17, %c0_18], %41 {strides = array<i32>} : memref<1x128xf32, #tpu.memory_space<vmem>>, vector<1x128xf32>,
    %c0_i32_19 = arith.constant 0 : i32
    %43 = arith.cmpi eq, %arg1, %c0_i32_19 : i32
    %44 = arith.extui %43 : i1 to i32
    %c0_i32_20 = arith.constant 0 : i32
    %45 = arith.cmpi ne, %44, %c0_i32_20 : i32
    scf.if %45 {
      %c0_21 = arith.constant 0 : index
      %c0_22 = arith.constant 0 : index
      %46 = vector.load %arg5[%c0_21, %c0_22] : memref<1x128xf32, #tpu.memory_space<vmem>>, vector<1x128xf32>
      %c0_23 = arith.constant 0 : index
      %c0_24 = arith.constant 0 : index
      %c0_25 = arith.constant 0 : index
      %47 = vector.load %arg4[%c0_23, %c0_24, %c0_25] : memref<1x1x128xf32, #tpu.memory_space<vmem>>, vector<1x1x128xf32>
      %48 = vector.shape_cast %47 : vector<1x1x128xf32> to vector<1x128xf32>
      %49 = vector.shape_cast %46 : vector<1x128xf32> to vector<1x1x128xf32>
      tpu.vector_store %arg4[%c0_23, %c0_24, %c0_25], %49 {strides = array<i32>} : memref<1x1x128xf32, #tpu.memory_space<vmem>>, vector<1x1x128xf32>,
    } else {
    }
    return
  }
  func.func @transform_0(%arg0: i32, %arg1: i32) -> (i32, i32) {
    %c1_i32 = arith.constant 1 : i32
    %0 = arith.muli %arg0, %c1_i32 : i32
    %1 = arith.addi %0, %arg1 : i32
    %c0_i32 = arith.constant 0 : i32
    %c0_i32_0 = arith.constant 0 : i32
    return %1, %c0_i32 : i32, i32
  }
  func.func @transform_1(%arg0: i32, %arg1: i32) -> (i32, i32) {
    %c1_i32 = arith.constant 1 : i32
    %0 = arith.muli %arg0, %c1_i32 : i32
    %1 = arith.addi %0, %arg1 : i32
    %c0_i32 = arith.constant 0 : i32
    %c0_i32_0 = arith.constant 0 : i32
    return %1, %c0_i32 : i32, i32
  }
  func.func @transform_2(%arg0: i32, %arg1: i32) -> (i32, i32, i32) {
    %c0_i32 = arith.constant 0 : i32
    %c0_i32_0 = arith.constant 0 : i32
    %c0_i32_1 = arith.constant 0 : i32
    return %arg0, %c0_i32, %c0_i32_0 : i32, i32, i32
  }
}

</mosaic_0001>

<bundles_post_ra>
// kernel: tpu_custom_call.1
= control target key start
LH: loop header
LB: loop body
LE: loop exit
PB: predicated region body
PF: predicated region fallthrough
CT: control target
= control target key end

     0   :  { %7 = vsyncpa [#allocation4], 0  ;;  %s861_s0 = inlined_call_operand.hbm [shape: f32[16,128], index: 0, kind: input, shape index: {}]   ;;  %s862_s1 = inlined_call_operand.hbm [shape: f32[16,128], index: 1, kind: input, shape index: {}]   ;;  %s863_s2 = inlined_call_operand.hbm [shape: f32[2,1,128], index: 2, kind: output, shape index: {}]  }
   0x1   :  { %9 = vsyncpa [#allocation4 + $0x1], 0 }
   0x2   :  { %10 = vsyncpa [#allocation7], 0 }
   0x3   :  { %12 = vsyncpa [#allocation7 + $0x1], 0 }
   0x4   :  { %13 = vsyncpa [#allocation5], 0 }
   0x5   :  { %15 = vsyncpa [#allocation5 + $0x1], 0  ;;  %s640_s9 = smov 0   ;;  %s642_s10 = smov 0  }
   0x6   :  { %s644_s11 = smov 0   ;;  %s646_s12 = smov 0  }
   0x7   :  { %s648_s13 = smov 0   ;;  %s650_s14 = smov 0  }
   0x8 LB: > { %s380_s15 = sadd.s32 4294967295, %s618_s14   ;;  %s381_s16 = sadd.s32 4294967294, %s618_s14   ;;  %s618_s14 = sphi %s650_s14, %s21_s14   ;;  %s614_s13 = sphi %s648_s13, %s883_s13   ;;  %s610_s12 = sphi %s646_s12, %s882_s12   ;;  %s606_s11 = sphi %s644_s11, %s881_s11   ;;  %s602_s10 = sphi %s642_s10, %s880_s10   ;;  %s598_s9 = sphi %s640_s9, %s879_s9  }
   0x9   : > { %s33_s17 = sadd.s32 1, %s614_s13  ;;  %s42_s18 = sadd.s32 1, %s606_s11 }
   0xa   : > { %p35_p0 = scmp.ge.s32.totalorder %s33_s17, 2  ;;  %p49_p1 = scmp.ne.s32.totalorder %s606_s11, %s602_s10 }
   0xb   : > { %p50_p2 = scmp.eq.s32.totalorder %s618_s14, 0  ;;  %p55_p3 = scmp.ne.s32.totalorder %s602_s10, %s598_s9 }
   0xc   : > { %s885_s17 = smov (%p35_p0, %s33_s17), 0  ;;  %p56_p5 = scmp.eq.s32.totalorder %s380_s15, 0 }
   0xd   : > { %p681_p4 = por %p50_p2, %p49_p1  ;;  %s39_s20 = ssub.s32 %s614_s13, %s885_s17 }
   0xe   : > { %p107_p6 = scmp.eq.s32.totalorder %s380_s15, 1  ;;  %p40_p7 = scmp.eq.s32.totalorder %s39_s20, 0 }
   0xf   : > { %p687_p8 = por %p56_p5, %p55_p3  ;;  %p113_p10 = scmp.eq.s32.totalorder %s381_s16, 1 }
  0x10   : > { %p691_p9 = por %p107_p6, %p49_p1  ;;  %p414_p13 = scmp.lt.s32.totalorder %s618_s14, 2 }
  0x11   : > { %s867_s21 = scalar_select %p687_p8, 1, 0 }
  0x12   : > { %s868_s22 = scalar_select %p691_p9, 1, 0 }
  0x13   : > { %s696_s23 = scalar_select %p40_p7, %s606_s11, %s42_s18  }
  0x14   : > { %p698_p11 = por %p113_p10, %p55_p3  ;;  %s705_s25 = sand.u32 1, %s606_s11  }
  0x15   : > { %s384_s26 = sshll.u32 %s705_s25, 3  ;;  %s385_s27 = sshll.u32 %s614_s13, 7 }
  0x16   : > { %s869_s24 = scalar_select %p698_p11, 1, 0 }
  0x17   : > { %s714_s30 = scalar_lea.hbm %s861_s0, %s385_s27  ;;  %s137_s3 = scalar_lea.vmem [#allocation3], %s384_s26 }
  0x18   : > { %s145_s4 = sshll.u32 %s137_s3, 4  ;;  %p722_p0 = pnand %p414_p13, %p681_p4  ;;  %s718_s4 = int_to_ptr.vmem [resolvable:$true] %s145_s4 }
  0x19   : > { %s134_s6 = scalar_lea.sflag [#allocation4], %s705_s25  ;;  %s472_s7 = scalar_lea.hbm %s714_s30, 128 }
  0x1a   : > { %p473_p3 = scmp.ne.s32.totalorder %s714_s30, %s472_s7  ;;  %p474_p5 = pneg %p722_p0 }
  0x1b   : > { %s477_s16 = scalar_lea.hbm %s861_s0, 256  ;;  %p478_p4 = scmp.lt.u32.totalorder %s714_s30, %s861_s0 }
  0x1c   : > { %p475_p6 = pnand %p474_p5, %p473_p3  ;;  %p479_p10 = scmp.lt.u32.totalorder %s477_s16, %s472_s7 }
  0x1d   : > { %p481_p12 = scmp.lt.u32.totalorder %s472_s7, %s714_s30 }
  0x1e   : > { %p476_p7 = pneg %p475_p6  ;;  %p480_p13 = por %p479_p10, %p478_p4 }
  0x20   : > { %p482_p1 = por %p481_p12, %p480_p13 }
  0x22   : > { %p483_p2 = pnand %p482_p1, %p476_p7 }
  0x24   : > { %486 = shalt.err (!%p483_p2)
}
  0x25   : > { %s487_s20 = scalar_lea.vmem %s718_s4, 128  ;;  %s620_s28 = smov [#allocation3]  }
  0x26   : > { %p488_p3 = scmp.ne.s32.totalorder %s718_s4, %s487_s20  ;;  %s492_s29 = sshll.u32 %s620_s28, 4  ;;  %s493_s29 = int_to_ptr.vmem [resolvable:$false] %s492_s29 }
  0x27   : > { %s494_s3 = scalar_lea.vmem %s493_s29, 256  ;;  %p495_p9 = scmp.lt.s32.totalorder %s718_s4, %s493_s29 }
  0x28   : > { %p490_p6 = pnand %p488_p3, %p474_p5  ;;  %p496_p4 = scmp.lt.s32.totalorder %s494_s3, %s487_s20 }
  0x2a   : > { %p491_p11 = pneg %p490_p6  ;;  %p497_p10 = por %p496_p4, %p495_p9 }
  0x2c   : > { %p498_p12 = pnand %p497_p10, %p491_p11 }
  0x2e   : > { %501 = shalt.err (!%p498_p12)
}
  0x2f   : > { %406 = dma.hbm_to_vmem [thread:$0]  (!%p722_p0), %s714_s30, 128, %s718_s4, %s134_s6  }
  0x30   : > { %p871_p1 = scmp.lt.s32.totalorder %s618_s14, 3  ;;  %p872_p2 = scmp.ge.s32.totalorder %s618_s14, 1 }
  0x31   : > { %s767_s16 = scalar_lea.hbm %s862_s1, %s385_s27  ;;  %s156_s18 = scalar_lea.vmem [#allocation6], %s384_s26 }
  0x32   : > { %p758_p7 = pnand %p872_p2, %p871_p1  ;;  %s164_s19 = sshll.u32 %s156_s18, 4  ;;  %s165_s19 = int_to_ptr.vmem [resolvable:$true] %s164_s19 }
  0x33   : > { %s153_s30 = scalar_lea.sflag [#allocation7], %s705_s25  ;;  %s502_s4 = scalar_lea.hbm %s767_s16, 128 }
  0x34   : > { %s873_s7 = scalar_select %p758_p7, 1, 0 }
  0x35   : > { %p503_p9 = scmp.ne.s32.totalorder %s767_s16, %s502_s4  ;;  %s507_s27 = scalar_lea.hbm %s862_s1, 256 }
  0x36   : > { %p508_p3 = scmp.lt.u32.totalorder %s767_s16, %s862_s1  ;;  %p509_p6 = scmp.lt.u32.totalorder %s507_s27, %s502_s4 }
  0x37   : > { %p505_p11 = pnand %p503_p9, %p474_p5  ;;  %p511_p10 = scmp.lt.u32.totalorder %s502_s4, %s767_s16 }
  0x38   : > { %p510_p4 = por %p509_p6, %p508_p3 }
  0x39   : > { %p506_p13 = pneg %p505_p11 }
  0x3a   : > { %p512_p12 = por %p511_p10, %p510_p4 }
  0x3c   : > { %p513_p1 = pnand %p512_p12, %p506_p13 }
  0x3e   : > { %516 = shalt.err (!%p513_p1)
}
  0x3f   : > { %s517_s25 = scalar_lea.vmem %s165_s19, 128  ;;  %s621_s26 = smov [#allocation6]  }
  0x40   : > { %p518_p2 = scmp.ne.s32.totalorder %s165_s19, %s517_s25  ;;  %s522_s3 = sshll.u32 %s621_s26, 4  ;;  %s523_s3 = int_to_ptr.vmem [resolvable:$false] %s522_s3 }
  0x41   : > { %s524_s8 = scalar_lea.vmem %s523_s3, 256  ;;  %p525_p8 = scmp.lt.s32.totalorder %s165_s19, %s523_s3 }
  0x42   : > { %p520_p9 = pnand %p518_p2, %p474_p5  ;;  %p526_p7 = scmp.lt.s32.totalorder %s524_s8, %s517_s25 }
  0x44   : > { %p521_p11 = pneg %p520_p9  ;;  %p527_p3 = por %p526_p7, %p525_p8 }
  0x46   : > { %p528_p6 = pnand %p527_p3, %p521_p11 }
  0x48   : > { %531 = shalt.err (!%p528_p6)
}
  0x49   : > { %409 = dma.hbm_to_vmem [thread:$0]  (!%p722_p0), %s767_s16, 128, %s165_s19, %s153_s30  }
  0x4a   : > { %p874_p13 = scmp.ne.s32.totalorder %s873_s7, 0 }
  0x4b   : > { %s794_s15 = sand.u32 (!%p874_p13), 1, %s602_s10   ;;  %p875_p5 = scmp.ne.s32.totalorder (!%p874_p13), %s867_s21, 0 }
  0x4c   : > { %173 = sbr.rel (%p874_p13) target bundleno = 164 (0xa4), region = 28  ;;  %s389_s18 = sshll.u32 (!%p874_p13), %s794_s15, 3 }
  0x4d   : > { %s176_s4 = scalar_lea.sflag (!%p874_p13), [#allocation4], %s794_s15  ;;  %s179_s6 = scalar_lea.vmem (!%p874_p13), [#allocation3], %s389_s18 }
  0x53   : > { %585 = dma.done.wait (%p875_p5), %s176_s4, 128  }
  0x54   : > { %587 = vsyncadd (%p875_p5), %s176_s4, 4294967168  ;;  %s185_s5 = scalar_lea.sflag [#allocation7], %s794_s15  ;;  %s188_s16 = scalar_lea.vmem [#allocation6], %s389_s18 }
  0x55   : > { %589 = dma.done.wait (%p875_p5), %s185_s5, 128  }
  0x56   : > { %591 = vsyncadd (%p875_p5), %s185_s5, 4294967168  ;;  %v622_v0 = vmov 0.0   ;;  %v220_v1 = vld [vmem:[%s179_s6] sm:$0xff]  ;;  %v221_v5 = vld [vmem:[%s188_s16] sm:$0xff]  ;;  %v623_v27 = vmov 0.75   ;;  %s212_s21 = scalar_lea.vmem [#allocation8], %s794_s15 }
  0x57   : > { %219 = vst [vmem:[#allocation2] sm:$0x1] %v622_v0  ;;  %v222_v2 = vand.u32 2147483647, %v220_v1  ;;  %v242_v6 = vmul.f32 2.0, %v221_v5  ;;  %v395_v12 = vtrunc.f32 %v221_v5  ;;  %v226_v15 = vmax.f32 %v220_v1, 0.0 }
  0x58   : > { %v227_v16 = vmul.f32 %v221_v5, %v220_v1  ;;  %s281_s7 = sshll.u32 %s212_s21, 4  ;;  %s392_s19 = sshll.u32 %s610_s12, 4  ;;  %s809_s7 = int_to_ptr.vmem [resolvable:$true] %s281_s7 }
  0x59   : > { %v223_v3 = vsub.f32 0.0, %v222_v2  ;;  %v391_v9 = vadd.f32 -1.0, %v242_v6  ;;  %v396_v17 = vcvt.f32.s32 %v395_v12  ;;  %s814_s27 = scalar_lea.hbm %s863_s2, %s392_s19  ;;  %s269_s28 = scalar_lea.sflag [#allocation5], %s794_s15 }
  0x5a   : > { %v228_v23 = vsub.f32 %v226_v15, %v227_v16  ;;  %s532_s29 = scalar_lea.vmem %s809_s7, 16  ;;  %p876_p0 = scmp.ne.s32.totalorder %s868_s22, 0 }
  0x5b   : > { %v224_v4 = vmul.f32 1.442695, %v223_v3  ;;  %v244_v11 = vmul.f32 %v391_v9, %v220_v1  ;;  %vm240_vm2 = vcmp.eq.s32.totalorder %v396_v17, 0  ;;  %p533_p8 = scmp.ne.s32.totalorder %s809_s7, %s532_s29  ;;  %s624_s25 = smov [#allocation8]  }
  0x5c   : > { %v241_v28 = vsel %vm240_vm2, 0.25, %v623_v27  ;;  %s536_s12 = sshll.u32 %s624_s25, 4  ;;  %s537_s12 = int_to_ptr.vmem [resolvable:$false] %s536_s12 }
  0x5d   : > { %466 = vpow2.f32 %v224_v4  ;;  %vm245_vm0 = vcmp.ge.f32.partialorder %v244_v11, 0.0  ;;  %p534_p7 = pnand %p533_p8, %p876_p0  ;;  %s538_s26 = scalar_lea.vmem %s537_s12, 32 }
  0x5e   : > { %v254_v38 = vld [vmem:[#allocation2] sm:$0x1]  ;;  %p539_p10 = scmp.lt.s32.totalorder %s809_s7, %s537_s12  ;;  %p540_p12 = scmp.lt.s32.totalorder %s538_s26, %s532_s29 }
  0x5f   : > { %p535_p4 = pneg %p534_p7 }
  0x60   : > { %p541_p1 = por %p540_p12, %p539_p10 }
  0x62   : > { %p542_p2 = pnand %p541_p1, %p535_p4 }
  0x67   : > { %v467_v7 = vpop.eup %466 }
  0x68   : > { %v229_v8 = vadd.f32 1.0, %v467_v7  ;;  %v232_v10 = vmul.f32 -0.5, %v467_v7  ;;  %v235_v14 = vand.u32 2147483647, %v467_v7  ;;  %v246_v19 = vsel %vm245_vm0, 1.0, %v467_v7 }
  0x6a   : > { %468 = vlog2.f32 %v229_v8  ;;  %v233_v13 = vadd.f32 1.0, %v232_v10  ;;  %vm236_vm1 = vcmp.lt.f32.partialorder %v235_v14, 0.0004427343 }
  0x6b   : > { %470 = vrcp.f32 %v229_v8 }
  0x6c   : > { %v234_v18 = vmul.f32 %v467_v7, %v233_v13 }
  0x74   : > { %v469_v20 = vpop.eup %468 }
  0x75   : > { %v471_v21 = vpop.eup %470  ;;  %v231_v22 = vmul.f32 0.6931472, %v469_v20 }
  0x76   : > { %v249_v24 = vmul.f32 %v471_v21, %v246_v19 }
  0x77   : > { %v237_v25 = vsel %vm236_vm1, %v234_v18, %v231_v22 }
  0x78   : > { %v250_v26 = vsub.f32 1.0, %v249_v24  ;;  %v238_v29 = vadd.f32 %v237_v25, %v228_v23 }
  0x7a   : > { %v251_v30 = vmul.f32 %v250_v26, %v250_v26 }
  0x7c   : > { %v252_v31 = vmul.f32 %v251_v30, %v241_v28 }
  0x7e   : > { %v253_v32 = vmul.f32 %v252_v31, %v238_v29 }
  0x80   : > { %v255_v33 = vrot.slane %v253_v32, 4 }
  0x82   : > { %v256_v34 = vadd.f32 %v255_v33, %v253_v32 }
  0x84   : > { %v257_v35 = vrot.slane %v256_v34, 2 }
  0x86   : > { %v258_v36 = vadd.f32 %v257_v35, %v256_v34 }
  0x88   : > { %v259_v37 = vrot.slane %v258_v36, 1 }
  0x8a   : > { %v260_v39 = vadd.f32 %v259_v37, %v258_v36 }
  0x8c   : > { %v261_v40 = vadd.f32 %v260_v39, %v254_v38 }
  0x8e   : > { %262 = vst [vmem:[#allocation2] sm:$0x1] %v261_v40 }
  0x95   : > { %v266_v41 = vld [vmem:[#allocation2] sm:$0x1] }
  0x96   : > { %267 = vst [vmem:[%s212_s21] sm:$0x1] %v266_v41 }
  0x97   : > { %545 = shalt.err (!%p542_p2)
}
  0x98   : > { %s546_s3 = scalar_lea.hbm %s814_s27, 16  ;;  %s550_s18 = scalar_lea.hbm %s863_s2, 32 }
  0x99   : > { %p547_p9 = scmp.ne.s32.totalorder %s814_s27, %s546_s3  ;;  %p551_p6 = scmp.lt.u32.totalorder %s814_s27, %s863_s2 }
  0x9a   : > { %p552_p13 = scmp.lt.u32.totalorder %s550_s18, %s546_s3  ;;  %p554_p8 = scmp.lt.u32.totalorder %s546_s3, %s814_s27 }
  0x9b   : > { %p548_p11 = pnand %p547_p9, %p876_p0 }
  0x9c   : > { %p553_p5 = por %p552_p13, %p551_p6 }
  0x9d   : > { %p549_p3 = pneg %p548_p11 }
  0x9e   : > { %p555_p7 = por %p554_p8, %p553_p5 }
  0xa0   : > { %p556_p4 = pnand %p555_p7, %p549_p3 }
  0xa2   : > { %559 = shalt.err (!%p556_p4)
}
  0xa3   : > { %401 = dma.vmem_to_hbm [thread:$0]  (%p876_p0), %s809_s7, 16, %s814_s27, %s269_s28  }
  0xa4 PF: > { %s293_s5 = sand.u32 1, %s598_s9   ;;  %p877_p10 = scmp.ne.s32.totalorder %s869_s24, 0 }
  0xa5   : > { %p878_p12 = scmp.ge.s32.totalorder %s618_s14, 2  ;;  %s294_s16 = scalar_lea.sflag [#allocation5], %s293_s5 }
  0xa7   : > { %p411_p1 = pnand %p878_p12, %p877_p10 }
  0xa9   : > { %593 = dma.done.wait (!%p411_p1), %s294_s16, 16  }
  0xaa   : > { %595 = vsyncadd (!%p411_p1), %s294_s16, 4294967280  ;;  %s21_s14 = sadd.s32 1, %s618_s14   ;;  %s879_s9 = smov %s602_s10 }
  0xab   : > { %p18_p2 = scmp.ge.s32.totalorder %s21_s14, 4   ;;  %s880_s10 = smov %s606_s11 }
  0xac   : > { %s881_s11 = smov %s696_s23  ;;  %s882_s12 = smov %s614_s13 }
  0xad   : > { %s883_s13 = smov %s885_s17  ;;  %20 = sbr.rel (!%p18_p2) target bundleno = 8 (0x8), region = 94 }
  0xb4   :  { %298 = vsyncpa [#allocation4], 1 }
  0xb5   :  { %300 = vsyncpa [#allocation4 + $0x1], 1 }
  0xb6   :  { %301 = vsyncpa [#allocation7], 1 }
  0xb7   :  { %303 = vsyncpa [#allocation7 + $0x1], 1 }
  0xb8   :  { %304 = vsyncpa [#allocation5], 1 }
  0xb9   :  { %306 = vsyncpa [#allocation5 + $0x1], 1 }

</bundles_post_ra>
